<compile_context>
chip_gen: v6e
topology: v6e:2x2x1
jax: 0.10.0
libtpu: 0.0.40
codegen_flags: <defaults>
</compile_context>

<pallas_src>
from functools import partial

import jax
import jax.numpy as jnp
from jax.experimental import pallas as pl
from jax.experimental.pallas import tpu as pltpu


def _sigmoid(z):
    # sigmoid(z) == 0.5 * (tanh(z / 2) + 1): one EUP transcendental per element.
    return 0.5 * (jnp.tanh(0.5 * z) + 1.0)


# ---------------------------------------------------------------------------
# Fused single-pass kernel: grid = (B,), whole (C, HW) slab resident in VMEM.
# ---------------------------------------------------------------------------
def _dab_fused_kernel(x_ref, w_ca_ref, b_ca_ref, w_pa_ref, b_pa_ref, o_ref):
    x_raw = x_ref[0]                                    # (C, HW), input dtype
    x = x_raw.astype(jnp.float32)

    # Channel attention + "spatial" attention from the per-channel mean.
    mean = jnp.mean(x, axis=1, keepdims=True)           # (C, 1)
    ca = _sigmoid(
        jnp.dot(w_ca_ref[...], mean, preferred_element_type=jnp.float32)
        + b_ca_ref[...]
    )                                                   # (C, 1)
    sa = _sigmoid(mean)                                 # (C, 1)

    # Pixel attention: 1x1 conv == (C_out, C_in) @ (C_in, HW) on the MXU,
    # operands kept in the streaming dtype, f32 accumulation.
    pa = _sigmoid(
        jnp.dot(w_pa_ref[...], x_raw, preferred_element_type=jnp.float32)
        + b_pa_ref[...]
    )                                                   # (C, HW)

    o_ref[0] = (x * (ca + sa + pa)).astype(o_ref.dtype)


# ---------------------------------------------------------------------------
# Streaming kernel: flat 1-D grid over B * HW-tiles, ca+sa folded into `scale`.
# ---------------------------------------------------------------------------
def _dab_stream_kernel(x_ref, w_pa_ref, b_pa_ref, scale_ref, o_ref):
    x_raw = x_ref[0]                                    # (C, hw_tile)
    pa = _sigmoid(
        jnp.dot(w_pa_ref[...], x_raw, preferred_element_type=jnp.float32)
        + b_pa_ref[...]
    )                                                   # (C, hw_tile)
    o_ref[0] = (x_raw.astype(jnp.float32) * (scale_ref[0] + pa)).astype(o_ref.dtype)


_FUSED_SLAB_BYTES = 2 * 1024 * 1024       # per-batch (C, HW) f32 compute slab cap
_STREAM_VMEM_BUDGET = 20 * 1024 * 1024    # streaming tile buffer budget (v7x-safe)
_MAX_HW_TILE = 8192


def _pick_hw_tile(hw, c, itemsize,
                  budget_bytes=_STREAM_VMEM_BUDGET, max_tile=_MAX_HW_TILE):
    """Largest spatial tile whose double-buffered in/out blocks (+ f32 compute
    temporaries) fit the VMEM budget. Full extent if it fits, otherwise a
    multiple of 128 lanes (no padding: the last tile may be ragged)."""
    per_lane = c * (4 * itemsize + 3 * 4)   # 2x in + 2x out buffers + ~3 f32 temps
    cap = max(128, min(max_tile, budget_bytes // per_lane))
    if hw <= cap:
        return hw
    return (cap // 128) * 128


@partial(jax.jit, static_argnames=("force_stream", "stream_hw_tile"))
def dab_block(x_nchw, w_ca, b_ca, w_pa, b_pa,
              force_stream=False, stream_hw_tile=None):
    """x_nchw: (B, C, H, W). w_ca / w_pa: (C, C) in PyTorch (out, in) layout.
    b_ca / b_pa: (C,).  Output dtype == input dtype."""
    B, C, H, W = x_nchw.shape
    HW = H * W
    x = x_nchw.reshape(B, C, HW)            # contiguous reshape, no HBM pass
    dt = x.dtype
    itemsize = jnp.dtype(dt).itemsize

    w_pa_k = w_pa.astype(dt)                            # MXU operand in stream dtype
    b_pa_k = b_pa.astype(jnp.float32).reshape(C, 1)

    fits_fused = (C * HW * 4) <= _FUSED_SLAB_BYTES

    if fits_fused and not force_stream:
        # ---- single-pass fused path: 1 read + 1 write of x ----------------
        w_ca_k = w_ca.astype(jnp.float32)
        b_ca_k = b_ca.astype(jnp.float32).reshape(C, 1)
        out = pl.pallas_call(
            _dab_fused_kernel,
            out_shape=jax.ShapeDtypeStruct((B, C, HW), dt),
            grid_spec=pltpu.PrefetchScalarGridSpec(
                num_scalar_prefetch=0,
                grid=(B,),
                in_specs=[
                    pl.BlockSpec((1, C, HW), lambda b: (b, 0, 0)),
                    pl.BlockSpec((C, C), lambda b: (0, 0)),   # resident w_ca
                    pl.BlockSpec((C, 1), lambda b: (0, 0)),   # resident b_ca
                    pl.BlockSpec((C, C), lambda b: (0, 0)),   # resident w_pa
                    pl.BlockSpec((C, 1), lambda b: (0, 0)),   # resident b_pa
                ],
                out_specs=pl.BlockSpec((1, C, HW), lambda b: (b, 0, 0)),
            ),
            compiler_params=pltpu.CompilerParams(
                dimension_semantics=("parallel",),
                vmem_limit_bytes=32 * 1024 * 1024,
            ),
        )(x, w_ca_k, b_ca_k, w_pa_k, b_pa_k)
        return out.reshape(B, C, H, W)

    # ---- streaming path: tiny per-(b, c) pre-pass in plain JAX, then one ---
    # ---- lane-dense streaming pass over x (ca + sa folded into `scale`) ----
    mean = jnp.mean(x.astype(jnp.float32), axis=2)                      # (B, C)
    ca = jax.nn.sigmoid(mean @ w_ca.astype(jnp.float32).T
                        + b_ca.astype(jnp.float32))                     # (B, C)
    sa = jax.nn.sigmoid(mean)                                           # (B, C)
    scale = (ca + sa)[:, :, None]                                       # (B, C, 1)

    hw_tile = stream_hw_tile if stream_hw_tile is not None else \
        _pick_hw_tile(HW, C, itemsize)
    T = -(-HW // hw_tile)                   # ragged last tile handled by Pallas

    out = pl.pallas_call(
        _dab_stream_kernel,
        out_shape=jax.ShapeDtypeStruct((B, C, HW), dt),
        grid_spec=pltpu.PrefetchScalarGridSpec(
            num_scalar_prefetch=0,
            grid=(B * T,),                  # flat 1-D grid: even megacore split
            in_specs=[
                pl.BlockSpec((1, C, hw_tile), lambda i: (i // T, 0, i % T)),
                pl.BlockSpec((C, C), lambda i: (0, 0)),       # resident weight
                pl.BlockSpec((C, 1), lambda i: (0, 0)),       # resident bias
                pl.BlockSpec((1, C, 1), lambda i: (i // T, 0, 0)),  # per-batch scale
            ],
            out_specs=pl.BlockSpec((1, C, hw_tile), lambda i: (i // T, 0, i % T)),
        ),
        compiler_params=pltpu.CompilerParams(
            dimension_semantics=("parallel",),
            vmem_limit_bytes=32 * 1024 * 1024,
        ),
    )(x, w_pa_k, b_pa_k, scale)
    return out.reshape(B, C, H, W)


def _reference(x_nchw, w_ca, b_ca, w_pa, b_pa):
    # Pure-JAX reference mirroring the PyTorch forward.
    mean = jnp.mean(x_nchw, axis=(2, 3))                                # (B, C)
    ca = jax.nn.sigmoid(mean @ w_ca.T + b_ca)[:, :, None, None]
    sa = jax.nn.sigmoid(mean)[:, :, None, None]
    pa = jax.nn.sigmoid(
        jnp.einsum("oc,bchw->bohw", w_pa, x_nchw) + b_pa[None, :, None, None]
    )
    return x_nchw * ca + x_nchw * sa + x_nchw * pa


if __name__ == "__main__":
    key = jax.random.PRNGKey(0)
    k_x, k_wca, k_bca, k_wpa, k_bpa, k_x2 = jax.random.split(key, 6)

    B, C, H, W = 2, 4, 16, 16
    x = jax.random.normal(k_x, (B, C, H, W), dtype=jnp.float32)

    # Deterministic parameter init (PyTorch-like uniform(+-1/sqrt(fan_in)))
    bound = 1.0 / float(C) ** 0.5
    w_ca = jax.random.uniform(k_wca, (C, C), jnp.float32, -bound, bound)
    b_ca = jax.random.uniform(k_bca, (C,), jnp.float32, -bound, bound)
    w_pa = jax.random.uniform(k_wpa, (C, C), jnp.float32, -bound, bound)
    b_pa = jax.random.uniform(k_bpa, (C,), jnp.float32, -bound, bound)

    # 1) Fused single-pass path (per-batch slab resident in VMEM).
    out = jax.block_until_ready(dab_block(x, w_ca, b_ca, w_pa, b_pa))
    ref = _reference(x, w_ca, b_ca, w_pa, b_pa)
    assert out.shape == (B, C, H, W)
    assert jnp.allclose(out, ref, atol=1e-5, rtol=1e-5), "fused path mismatch"

    # 2) Streaming path with a ragged (non-dividing) spatial tile: exercises
    #    the no-pad boundary handling (HW = 272, tile = 128 -> masked last tile).
    H2, W2 = 16, 17
    x2 = jax.random.normal(k_x2, (B, C, H2, W2), dtype=jnp.float32)
    out2 = jax.block_until_ready(
        dab_block(x2, w_ca, b_ca, w_pa, b_pa, force_stream=True, stream_hw_tile=128)
    )
    ref2 = _reference(x2, w_ca, b_ca, w_pa, b_pa)
    assert out2.shape == (B, C, H2, W2)
    assert jnp.allclose(out2, ref2, atol=1e-5, rtol=1e-5), "stream path mismatch"

    print("KERNEL_OK")
</pallas_src>

<mosaic_0001>
module attributes {stable_mosaic.version = 11 : i64} {
  func.func @_dab_fused_kernel(%arg0: i32, %arg1: memref<1x4x256xf32, #tpu.memory_space<vmem>>, %arg2: memref<4x4xf32, #tpu.memory_space<vmem>>, %arg3: memref<4x1xf32, #tpu.memory_space<vmem>>, %arg4: memref<4x4xf32, #tpu.memory_space<vmem>>, %arg5: memref<4x1xf32, #tpu.memory_space<vmem>>, %arg6: memref<1x4x256xf32, #tpu.memory_space<vmem>>) attributes {dimension_semantics = [#tpu.dimension_semantics<parallel>], iteration_bounds = array<i64: 2>, scalar_prefetch = 0 : i64, scratch_operands = 0 : i64, tpu.core_type = #tpu.core_type<tc>, window_params = [{transform_indices = @transform_0, window_bounds = array<i64: 1, 4, 256>}, {pipeline_mode = #tpu.pipeline_mode<synchronous>, transform_indices = @transform_1, window_bounds = array<i64: 4, 4>}, {pipeline_mode = #tpu.pipeline_mode<synchronous>, transform_indices = @transform_2, window_bounds = array<i64: 4, 1>}, {pipeline_mode = #tpu.pipeline_mode<synchronous>, transform_indices = @transform_3, window_bounds = array<i64: 4, 4>}, {pipeline_mode = #tpu.pipeline_mode<synchronous>, transform_indices = @transform_4, window_bounds = array<i64: 4, 1>}, {transform_indices = @transform_5, window_bounds = array<i64: 1, 4, 256>}]} {
    %c0 = arith.constant 0 : index
    %c0_0 = arith.constant 0 : index
    %c0_1 = arith.constant 0 : index
    %0 = vector.load %arg1[%c0, %c0_0, %c0_1] : memref<1x4x256xf32, #tpu.memory_space<vmem>>, vector<1x4x256xf32>
    %1 = vector.shape_cast %0 : vector<1x4x256xf32> to vector<4x256xf32>
    %cst = arith.constant dense<0.000000e+00> : vector<4xf32>
    %2 = vector.multi_reduction <add>, %1, %cst [1] : vector<4x256xf32> to vector<4xf32>
    %3 = vector.shape_cast %2 : vector<4xf32> to vector<4x1xf32>
    %cst_2 = arith.constant 2.560000e+02 : f32
    %4 = vector.broadcast %cst_2 : f32 to vector<4x1xf32>
    %5 = arith.divf %3, %4 : vector<4x1xf32>
    %c0_3 = arith.constant 0 : index
    %c0_4 = arith.constant 0 : index
    %6 = vector.load %arg2[%c0_3, %c0_4] : memref<4x4xf32, #tpu.memory_space<vmem>>, vector<4x4xf32>
    %cst_5 = arith.constant dense<0.000000e+00> : vector<4x1xf32>
    %7 = tpu.matmul %6, %5, %cst_5 {dimension_numbers = #tpu.dot_dimension_numbers<[1], [0], [0], [1], [0, 0, 1, 1], [], []>} : vector<4x4xf32>, vector<4x1xf32>, vector<4x1xf32> -> vector<4x1xf32>
    %c0_6 = arith.constant 0 : index
    %c0_7 = arith.constant 0 : index
    %8 = vector.load %arg3[%c0_6, %c0_7] : memref<4x1xf32, #tpu.memory_space<vmem>>, vector<4x1xf32>
    %9 = arith.addf %7, %8 : vector<4x1xf32>
    %cst_8 = arith.constant 5.000000e-01 : f32
    %10 = vector.broadcast %cst_8 : f32 to vector<4x1xf32>
    %11 = arith.mulf %10, %9 : vector<4x1xf32>
    %12 = math.tanh %11 : vector<4x1xf32>
    %cst_9 = arith.constant 1.000000e+00 : f32
    %13 = vector.broadcast %cst_9 : f32 to vector<4x1xf32>
    %14 = arith.addf %12, %13 : vector<4x1xf32>
    %cst_10 = arith.constant 5.000000e-01 : f32
    %15 = vector.broadcast %cst_10 : f32 to vector<4x1xf32>
    %16 = arith.mulf %15, %14 : vector<4x1xf32>
    %cst_11 = arith.constant 5.000000e-01 : f32
    %17 = vector.broadcast %cst_11 : f32 to vector<4x1xf32>
    %18 = arith.mulf %17, %5 : vector<4x1xf32>
    %19 = math.tanh %18 : vector<4x1xf32>
    %cst_12 = arith.constant 1.000000e+00 : f32
    %20 = vector.broadcast %cst_12 : f32 to vector<4x1xf32>
    %21 = arith.addf %19, %20 : vector<4x1xf32>
    %cst_13 = arith.constant 5.000000e-01 : f32
    %22 = vector.broadcast %cst_13 : f32 to vector<4x1xf32>
    %23 = arith.mulf %22, %21 : vector<4x1xf32>
    %c0_14 = arith.constant 0 : index
    %c0_15 = arith.constant 0 : index
    %24 = vector.load %arg4[%c0_14, %c0_15] : memref<4x4xf32, #tpu.memory_space<vmem>>, vector<4x4xf32>
    %cst_16 = arith.constant dense<0.000000e+00> : vector<4x256xf32>
    %25 = tpu.matmul %24, %1, %cst_16 {dimension_numbers = #tpu.dot_dimension_numbers<[1], [0], [0], [1], [0, 0, 1, 1], [], []>} : vector<4x4xf32>, vector<4x256xf32>, vector<4x256xf32> -> vector<4x256xf32>
    %c0_17 = arith.constant 0 : index
    %c0_18 = arith.constant 0 : index
    %26 = vector.load %arg5[%c0_17, %c0_18] : memref<4x1xf32, #tpu.memory_space<vmem>>, vector<4x1xf32>
    %27 = vector.broadcast %26 : vector<4x1xf32> to vector<4x256xf32>
    %28 = arith.addf %25, %27 : vector<4x256xf32>
    %cst_19 = arith.constant 5.000000e-01 : f32
    %29 = vector.broadcast %cst_19 : f32 to vector<4x256xf32>
    %30 = arith.mulf %29, %28 : vector<4x256xf32>
    %31 = math.tanh %30 : vector<4x256xf32>
    %cst_20 = arith.constant 1.000000e+00 : f32
    %32 = vector.broadcast %cst_20 : f32 to vector<4x256xf32>
    %33 = arith.addf %31, %32 : vector<4x256xf32>
    %cst_21 = arith.constant 5.000000e-01 : f32
    %34 = vector.broadcast %cst_21 : f32 to vector<4x256xf32>
    %35 = arith.mulf %34, %33 : vector<4x256xf32>
    %36 = arith.addf %16, %23 : vector<4x1xf32>
    %37 = vector.broadcast %36 : vector<4x1xf32> to vector<4x256xf32>
    %38 = arith.addf %37, %35 : vector<4x256xf32>
    %39 = arith.mulf %1, %38 : vector<4x256xf32>
    %c0_22 = arith.constant 0 : index
    %c0_23 = arith.constant 0 : index
    %c0_24 = arith.constant 0 : index
    %40 = vector.load %arg6[%c0_22, %c0_23, %c0_24] : memref<1x4x256xf32, #tpu.memory_space<vmem>>, vector<1x4x256xf32>
    %41 = vector.shape_cast %40 : vector<1x4x256xf32> to vector<4x256xf32>
    %42 = vector.shape_cast %39 : vector<4x256xf32> to vector<1x4x256xf32>
    tpu.vector_store %arg6[%c0_22, %c0_23, %c0_24], %42 {strides = array<i32>} : memref<1x4x256xf32, #tpu.memory_space<vmem>>, vector<1x4x256xf32>,
    return
  }
  func.func @transform_0(%arg0: i32) -> (i32, i32, i32) {
    %c0_i32 = arith.constant 0 : i32
    %c0_i32_0 = arith.constant 0 : i32
    %c0_i32_1 = arith.constant 0 : i32
    return %arg0, %c0_i32, %c0_i32_0 : i32, i32, i32
  }
  func.func @transform_1(%arg0: i32) -> (i32, i32) {
    %c0_i32 = arith.constant 0 : i32
    %c0_i32_0 = arith.constant 0 : i32
    %c0_i32_1 = arith.constant 0 : i32
    return %c0_i32, %c0_i32_0 : i32, i32
  }
  func.func @transform_2(%arg0: i32) -> (i32, i32) {
    %c0_i32 = arith.constant 0 : i32
    %c0_i32_0 = arith.constant 0 : i32
    %c0_i32_1 = arith.constant 0 : i32
    return %c0_i32, %c0_i32_0 : i32, i32
  }
  func.func @transform_3(%arg0: i32) -> (i32, i32) {
    %c0_i32 = arith.constant 0 : i32
    %c0_i32_0 = arith.constant 0 : i32
    %c0_i32_1 = arith.constant 0 : i32
    return %c0_i32, %c0_i32_0 : i32, i32
  }
  func.func @transform_4(%arg0: i32) -> (i32, i32) {
    %c0_i32 = arith.constant 0 : i32
    %c0_i32_0 = arith.constant 0 : i32
    %c0_i32_1 = arith.constant 0 : i32
    return %c0_i32, %c0_i32_0 : i32, i32
  }
  func.func @transform_5(%arg0: i32) -> (i32, i32, i32) {
    %c0_i32 = arith.constant 0 : i32
    %c0_i32_0 = arith.constant 0 : i32
    %c0_i32_1 = arith.constant 0 : i32
    return %arg0, %c0_i32, %c0_i32_0 : i32, i32, i32
  }
}

</mosaic_0001>

<bundles_post_ra>
// kernel: dab_block.1
= control target key start
LH: loop header
LB: loop body
LE: loop exit
PB: predicated region body
PF: predicated region fallthrough
CT: control target
= control target key end

     0   :  { %s574_s18 = smov 0   ;;  %s615_s0 = inlined_call_operand.vmem [shape: f32[2,4,256], index: 0, kind: input, shape index: {}]   ;;  %s616_s1 = inlined_call_operand.vmem [shape: f32[4,4], index: 1, kind: input, shape index: {}]   ;;  %s617_s2 = inlined_call_operand.vmem [shape: f32[4,1], index: 2, kind: input, shape index: {}]   ;;  %s618_s3 = inlined_call_operand.vmem [shape: f32[4,4], index: 3, kind: input, shape index: {}]   ;;  %s619_s4 = inlined_call_operand.vmem [shape: f32[4,1], index: 4, kind: input, shape index: {}]   ;;  %s620_s5 = inlined_call_operand.vmem [shape: f32[2,4,256], index: 5, kind: output, shape index: {}]  }
   0x1 LB: > { %s486_s19 = sadd.s32 4294967295, %s539_s18   ;;  %p490_p0 = scmp.ge.s32.totalorder %s539_s18, 1  ;;  %s539_s18 = sphi %s574_s18, %s15_s18  }
   0x2   : > { %p187_p1 = scmp.lt.s32.totalorder %s539_s18, 3 }
   0x4   : > { %p188_p2 = pnand %p490_p0, %p187_p1 }
   0x5   : > { %p215_p3 = scmp.lt.s32.totalorder (!%p188_p2), %s486_s19, 1 }
   0x6   : > { %191 = sbr.rel (%p188_p2) target bundleno = 509 (0x1fd), region = 40 }
   0xb   : > { %s622_s19 = smov (!%p215_p3, %s486_s19), 1  ;;  %vm229_vm0 = vcmask 1043456   ;;  %v541_v5 = vmov 0.0   ;;  %vm542_vm1 = vmmov 0   ;;  %vm239_vm2 = vcmask 31744  }
   0xc   : > { %s502_s20 = sshll.u32 %s622_s19, 3  ;;  %506 = vmatprep.subr.mxu0 %v541_v5  ;;  %402 = vmatprep.mubr.f32.mxu1 %v541_v5  ;;  %v324_v6 = vld [vmem:[%s618_s3] sm:$0xf]  ;;  %v543_v7 = vmov 0  }
   0xd   : > { %s219_s23 = scalar_lea.vmem %s615_s0, %s502_s20  ;;  %508 = vmatprep.mubr.msk.f32.mxu0 %vm542_vm1, %v541_v5  ;;  %522 = vset.pattern.permute.xlu0 %v543_v7  ;;  %v237_v10 = vld [vmem:[%s616_s1] sm:$0xf]  ;;  %s224_s9 = scalar_lea.vmem %s620_s5, %s502_s20 }
   0xe   : > { %v225_v0 = vld [vmem:[%s219_s23] sm:$0xff]  ;;  %523 = vset.pattern.permute.xlu1 %v543_v7 }
   0xf   : > { %v227_v1 = vcombine.high %v225_v0, %v225_v0  ;;  %v230_v2 = vsel %vm229_vm0, %v225_v0, 0.0  ;;  %v325_v11 = vld [vmem:[%s619_s4] sm:$0xf] }
  0x10   : > { %v238_v13 = vld [vmem:[%s617_s2] sm:$0xf] }
  0x11   : > { %v231_v3 = vsel %vm229_vm0, %v227_v1, 0.0  ;;  %497 = vmatprep.subr.msk.mxu1 %vm229_vm0, %v227_v1 }
  0x12   : > { %v232_v4 = vadd.f32 %v231_v3, %v230_v2  ;;  %498 = vmatpush1.msk.msra.mxu1 %vm229_vm0, %v225_v0 }
  0x13   : > { %499 = vmatmul.mubr.msk.f32.vlgmr.msra.gmra.mxu1 %vm239_vm2, %v324_v6 }
  0x14   : > { %233 = vadd.xlane.f32.xlu0 %v232_v4 }
  0x2a   : > { %328 = vperm.xlu0 %522, %v325_v11  }
  0x9d   : > { %v234_v8 = vpop.xlane.xlu0 %233 }
  0x9e   : > { %v236_v9 = vmul.f32 0.00390625, %v234_v8 }
  0xa0   : > { %507 = vmatpush3.msk.msra.mxu0 %vm229_vm0, %v236_v9  ;;  %v320_v12 = vmul.f32 0.5, %v236_v9 }
  0xa1   : > { %509 = vmatmul.mubr.msk.f32.vlgmr.msra.gmra.mxu0 %vm239_vm2, %v237_v10 }
  0xa2   : > { %525 = vtanh.f32 %v320_v12 }
  0xa5   : > { %v329_v26 = vpop.permute.xlu0 %328 }
  0xaf   : > { %v526_v18 = vpop.eup %525 }
  0xb0   : > { %v322_v19 = vadd.f32 1.0, %v526_v18 }
  0xb2   : > { %v323_v23 = vmul.f32 0.5, %v322_v19 }
  0xd3   : > { %v404_v25 = vpop.f32.mrf.mxu1 }
  0xd4   : > { %v405_v28 = vadd.f32 %v404_v25, %v329_v26 }
  0xd5   : > { %v406_v27 = vpop.f32.mrf.mxu1 }
  0xd6   : > { %v407_v29 = vadd.f32 %v406_v27, %v329_v26  ;;  %v409_v30 = vmul.f32 0.5, %v405_v28 }
  0xd8   : > { %v410_v31 = vmul.f32 0.5, %v407_v29 }
 0x161   : > { %v312_v14 = vpop.f32.mrf.mxu0 }
 0x162   : > { %v313_v15 = vadd.f32 %v312_v14, %v238_v13 }
 0x163   : > { %v510_v16 = vpop.f32.mrf.mxu0 }
 0x164   : > { %v316_v17 = vmul.f32 0.5, %v313_v15 }
 0x166   : > { %527 = vtanh.f32 %v316_v17 }
 0x167   : > { %529 = vtanh.f32 %v409_v30 }
 0x168   : > { %531 = vtanh.f32 %v410_v31 }
 0x173   : > { %v528_v20 = vpop.eup %527 }
 0x174   : > { %v318_v21 = vadd.f32 1.0, %v528_v20  ;;  %v530_v32 = vpop.eup %529 }
 0x175   : > { %v532_v33 = vpop.eup %531  ;;  %v413_v34 = vadd.f32 1.0, %v530_v32 }
 0x176   : > { %v319_v22 = vmul.f32 0.5, %v318_v21  ;;  %v414_v35 = vadd.f32 1.0, %v532_v33 }
 0x177   : > { %v415_v36 = vmul.f32 0.5, %v413_v34 }
 0x178   : > { %v417_v24 = vadd.f32 %v323_v23, %v319_v22  ;;  %v416_v37 = vmul.f32 0.5, %v414_v35 }
 0x17a   : > { %420 = vperm.xlu1 %523, %v417_v24  }
 0x1f5   : > { %v421_v38 = vpop.permute.xlu1 %420 }
 0x1f6   : > { %v423_v39 = vadd.f32 %v421_v38, %v415_v36  ;;  %v424_v40 = vadd.f32 %v421_v38, %v416_v37 }
 0x1f8   : > { %v427_v41 = vcombine.low %v423_v39, %v424_v40 }
 0x1fa   : > { %v429_v42 = vmul.f32 %v427_v41, %v225_v0 }
 0x1fc   : > { %430 = vst [vmem:[%s224_s9] sm:$0xff] %v429_v42 }
 0x1fd PF: > { %s15_s18 = sadd.s32 1, %s539_s18  }
 0x1fe   : > { %p12_p4 = scmp.ge.s32.totalorder %s15_s18, 4  }
 0x200   :  { %14 = sbr.rel (!%p12_p4) target bundleno = 1 (0x1), region = 70 }

</bundles_post_ra>
